<compile_context>
chip_gen: v7x
topology: tpu7x:2x2x1
jax: 0.10.0
libtpu: 0.0.40
codegen_flags: <defaults>
</compile_context>

<pallas_src>
import functools

import jax
import jax.numpy as jnp
from jax.experimental import pallas as pl
from jax.experimental.pallas import tpu as pltpu


def _round_up(x, m):
    return (x + m - 1) // m * m


def _pad2(x, rows, cols):
    pr, pc = rows - x.shape[0], cols - x.shape[1]
    if pr or pc:
        x = jnp.pad(x, ((0, pr), (0, pc)))
    return x


def _club_kernel(a_ref, mb_ref,
                 w13_ref, b13_ref,      # fused first-layer params: [H, 2H], [1, 2H]
                 w2_ref, b2_ref,        # mlp_mu second layer
                 w4_ref, b4_ref,        # mlp_logvar second layer
                 out_ref,               # (1, 128) f32: lane 0 = lld, lane 1 = bound
                 acc_pos, acc_s0, acc_s1, acc_s2, acc_m1, acc_m2,
                 *, true_b, padded_b):
    step = pl.program_id(0)
    tb = a_ref.shape[0]
    hp = w2_ref.shape[0]

    @pl.when(step == 0)
    def _init():
        for acc in (acc_pos, acc_s0, acc_s1, acc_s2, acc_m1, acc_m2):
            acc[...] = jnp.zeros_like(acc)

    a = a_ref[...]                                   # keep input dtype for the MXU
    mb = mb_ref[...].astype(jnp.float32)

    # Fused first layer: one [tb, H] @ [H, 2H] matmul, then split + tanh.
    h = jnp.dot(a, w13_ref[...], preferred_element_type=jnp.float32)
    h = jnp.tanh(h + b13_ref[...].astype(jnp.float32))
    h_mu, h_lv = h[:, :hp], h[:, hp:]

    mu = jnp.dot(h_mu.astype(w2_ref.dtype), w2_ref[...],
                 preferred_element_type=jnp.float32) + b2_ref[...].astype(jnp.float32)
    logvar = jnp.tanh(
        jnp.dot(h_lv.astype(w4_ref.dtype), w4_ref[...],
                preferred_element_type=jnp.float32) + b4_ref[...].astype(jnp.float32))
    inv_var = jnp.exp(-logvar)                       # 1 / exp(logvar)

    positive = -0.5 * (mu - mb) ** 2 * inv_var       # [tb, hp]

    mu_stat = mu
    if padded_b != true_b:                           # mask zero-padded batch rows
        row = jax.lax.broadcasted_iota(jnp.int32, (tb, 1), 0) + step * tb
        valid = (row < true_b).astype(jnp.float32)
        positive = positive * valid
        inv_var = inv_var * valid
        mu_stat = mu * valid

    ivmu = inv_var * mu
    acc_pos[...] += jnp.sum(positive, axis=0, keepdims=True)
    acc_s0[...] += jnp.sum(inv_var, axis=0, keepdims=True)
    acc_s1[...] += jnp.sum(ivmu, axis=0, keepdims=True)
    acc_s2[...] += jnp.sum(ivmu * mu, axis=0, keepdims=True)
    acc_m1[...] += jnp.sum(mu_stat, axis=0, keepdims=True)
    acc_m2[...] += jnp.sum(mu_stat * mu, axis=0, keepdims=True)

    @pl.when(step == pl.num_programs(0) - 1)
    def _finalize():
        inv_b = 1.0 / true_b
        mu_mean = acc_m1[...] * inv_b
        mu2_mean = acc_m2[...] * inv_b
        # sum_i negative[i,h] = -0.5 * (S2 - 2*mu_mean*S1 + mu2_mean*S0)
        neg_col = -0.5 * (acc_s2[...] - 2.0 * mu_mean * acc_s1[...]
                          + mu2_mean * acc_s0[...])
        pos_tot = jnp.sum(acc_pos[...], axis=1, keepdims=True)      # (1, 1)
        neg_tot = jnp.sum(neg_col, axis=1, keepdims=True)           # (1, 1)
        lld = pos_tot * inv_b
        bound = (pos_tot - neg_tot) * inv_b
        lane = jax.lax.broadcasted_iota(jnp.int32, out_ref.shape, 1)
        out_ref[...] = jnp.where(lane == 0, lld,
                                 jnp.where(lane == 1, bound, 0.0))


def club_forward(modal_a, modal_b, params, *, max_batch_tile=256):
    """Returns (lld, bound) scalars, matching CLUB.forward."""
    w1, b1, w2, b2, w3, b3, w4, b4 = params
    b, h = modal_a.shape

    h_pad = _round_up(max(h, 128), 128)              # lane-dense feature dim
    tile_b = min(_round_up(b, 8), max_batch_tile)
    b_pad = _round_up(b, tile_b)
    grid = (b_pad // tile_b,)

    a_p = _pad2(modal_a, b_pad, h_pad)
    mb_p = _pad2(modal_b, b_pad, h_pad)
    # Fuse the first-layer weights of mlp_mu / mlp_logvar into one [H, 2H] block.
    w13 = jnp.concatenate([_pad2(w1, h_pad, h_pad), _pad2(w3, h_pad, h_pad)], axis=1)
    b13 = jnp.concatenate([_pad2(b1, 1, h_pad), _pad2(b3, 1, h_pad)], axis=1)
    w2p, b2p = _pad2(w2, h_pad, h_pad), _pad2(b2, 1, h_pad)
    w4p, b4p = _pad2(w4, h_pad, h_pad), _pad2(b4, 1, h_pad)

    # TODO(synk): for very large hidden sizes the resident f32 weights exceed the
    # scoped VMEM limit (esp. v7x 64 MiB); that regime needs bf16 weights and/or a
    # K-grid axis with an f32 accumulator.  Not needed at these shapes.
    kernel = functools.partial(_club_kernel, true_b=b, padded_b=b_pad)
    resident = lambda i: (0, 0)
    out = pl.pallas_call(
        kernel,
        out_shape=jax.ShapeDtypeStruct((1, 128), jnp.float32),
        grid_spec=pltpu.PrefetchScalarGridSpec(
            num_scalar_prefetch=0,
            grid=grid,
            in_specs=[
                pl.BlockSpec((tile_b, h_pad), lambda i: (i, 0)),   # modal_a tile
                pl.BlockSpec((tile_b, h_pad), lambda i: (i, 0)),   # modal_b tile
                pl.BlockSpec((h_pad, 2 * h_pad), resident),        # w1 || w3
                pl.BlockSpec((1, 2 * h_pad), resident),            # b1 || b3
                pl.BlockSpec((h_pad, h_pad), resident),            # w2
                pl.BlockSpec((1, h_pad), resident),                # b2
                pl.BlockSpec((h_pad, h_pad), resident),            # w4
                pl.BlockSpec((1, h_pad), resident),                # b4
            ],
            out_specs=pl.BlockSpec((1, 128), resident),
            scratch_shapes=[pltpu.VMEM((1, h_pad), jnp.float32)] * 6,
        ),
        compiler_params=pltpu.CompilerParams(
            # "arbitrary": batch tiles accumulate shared full-batch statistics; a
            # "parallel" axis (v7x megacore) would require a cross-core reduction.
            dimension_semantics=("arbitrary",),
            vmem_limit_bytes=32 << 20,
        ),
    )(a_p, mb_p, w13, b13, w2p, b2p, w4p, b4p)
    return out[0, 0], out[0, 1]


def init_params(key, hidden_size):
    """Deterministic synthetic init (shapes match nn.Linear(hidden, hidden))."""
    ks = jax.random.split(key, 8)
    scale = 1.0 / jnp.sqrt(hidden_size)

    def lin(kw, kb):
        w = jax.random.uniform(kw, (hidden_size, hidden_size), jnp.float32,
                               -scale, scale)
        b = jax.random.uniform(kb, (1, hidden_size), jnp.float32, -scale, scale)
        return w, b

    w1, b1 = lin(ks[0], ks[1])
    w2, b2 = lin(ks[2], ks[3])
    w3, b3 = lin(ks[4], ks[5])
    w4, b4 = lin(ks[6], ks[7])
    return (w1, b1, w2, b2, w3, b3, w4, b4)


def club_reference(modal_a, modal_b, params):
    """Plain-JAX reference mirroring the PyTorch code (explicit repeat tiling)."""
    w1, b1, w2, b2, w3, b3, w4, b4 = params
    mu = jnp.tanh(modal_a @ w1 + b1) @ w2 + b2
    logvar = jnp.tanh(jnp.tanh(modal_a @ w3 + b3) @ w4 + b4)
    B = mu.shape[0]
    pred_tile = jnp.repeat(mu[:, None, :], B, axis=1)   # [B, B, H]
    true_tile = jnp.repeat(mu[None, :, :], B, axis=0)   # [B, B, H]
    positive = -(mu - modal_b) ** 2 / 2.0 / jnp.exp(logvar)
    negative = -jnp.mean((true_tile - pred_tile) ** 2, axis=1) / 2.0 / jnp.exp(logvar)
    lld = jnp.mean(jnp.sum(positive, -1))
    bound = jnp.mean(jnp.sum(positive, -1) - jnp.sum(negative, -1))
    return lld, bound


if __name__ == "__main__":
    batch, hidden = 8, 32

    key = jax.random.PRNGKey(0)
    k_a, k_b, k_p = jax.random.split(key, 3)
    modal_a = jax.random.normal(k_a, (batch, hidden), jnp.float32)
    modal_b = jax.random.normal(k_b, (batch, hidden), jnp.float32)
    params = init_params(k_p, hidden)

    lld, bound = club_forward(modal_a, modal_b, params)
    jax.block_until_ready((lld, bound))
    lld_ref, bound_ref = club_reference(modal_a, modal_b, params)
    assert jnp.allclose(lld, lld_ref, atol=1e-4, rtol=1e-4), (lld, lld_ref)
    assert jnp.allclose(bound, bound_ref, atol=1e-4, rtol=1e-4), (bound, bound_ref)

    # Ragged batch: exercises the padded-row mask path (B=5 -> padded to 8).
    lld5, bound5 = club_forward(modal_a[:5], modal_b[:5], params)
    jax.block_until_ready((lld5, bound5))
    lld5_ref, bound5_ref = club_reference(modal_a[:5], modal_b[:5], params)
    assert jnp.allclose(lld5, lld5_ref, atol=1e-4, rtol=1e-4), (lld5, lld5_ref)
    assert jnp.allclose(bound5, bound5_ref, atol=1e-4, rtol=1e-4), (bound5, bound5_ref)

    print("KERNEL_OK")
</pallas_src>

<mosaic_0001>
module attributes {stable_mosaic.version = 11 : i64} {
  func.func @_club_kernel(%arg0: i32, %arg1: memref<8x128xf32, #tpu.memory_space<vmem>>, %arg2: memref<8x128xf32, #tpu.memory_space<vmem>>, %arg3: memref<128x256xf32, #tpu.memory_space<vmem>>, %arg4: memref<1x256xf32, #tpu.memory_space<vmem>>, %arg5: memref<128x128xf32, #tpu.memory_space<vmem>>, %arg6: memref<1x128xf32, #tpu.memory_space<vmem>>, %arg7: memref<128x128xf32, #tpu.memory_space<vmem>>, %arg8: memref<1x128xf32, #tpu.memory_space<vmem>>, %arg9: memref<1x128xf32, #tpu.memory_space<vmem>>, %arg10: memref<1x128xf32, #tpu.memory_space<vmem>>, %arg11: memref<1x128xf32, #tpu.memory_space<vmem>>, %arg12: memref<1x128xf32, #tpu.memory_space<vmem>>, %arg13: memref<1x128xf32, #tpu.memory_space<vmem>>, %arg14: memref<1x128xf32, #tpu.memory_space<vmem>>, %arg15: memref<1x128xf32, #tpu.memory_space<vmem>>) attributes {dimension_semantics = [#tpu.dimension_semantics<arbitrary>], iteration_bounds = array<i64: 1>, scalar_prefetch = 0 : i64, scratch_operands = 6 : i64, tpu.core_type = #tpu.core_type<tc>, window_params = [{transform_indices = @transform_0, window_bounds = array<i64: 8, 128>}, {transform_indices = @transform_1, window_bounds = array<i64: 8, 128>}, {pipeline_mode = #tpu.pipeline_mode<synchronous>, transform_indices = @transform_2, window_bounds = array<i64: 128, 256>}, {pipeline_mode = #tpu.pipeline_mode<synchronous>, transform_indices = @transform_3, window_bounds = array<i64: 1, 256>}, {pipeline_mode = #tpu.pipeline_mode<synchronous>, transform_indices = @transform_4, window_bounds = array<i64: 128, 128>}, {pipeline_mode = #tpu.pipeline_mode<synchronous>, transform_indices = @transform_5, window_bounds = array<i64: 1, 128>}, {pipeline_mode = #tpu.pipeline_mode<synchronous>, transform_indices = @transform_6, window_bounds = array<i64: 128, 128>}, {pipeline_mode = #tpu.pipeline_mode<synchronous>, transform_indices = @transform_7, window_bounds = array<i64: 1, 128>}, {pipeline_mode = #tpu.pipeline_mode<synchronous>, transform_indices = @transform_8, window_bounds = array<i64: 1, 128>}]} {
    %c0_i32 = arith.constant 0 : i32
    %0 = arith.cmpi eq, %arg0, %c0_i32 : i32
    %1 = arith.extui %0 : i1 to i32
    %c0_i32_0 = arith.constant 0 : i32
    %2 = arith.cmpi ne, %1, %c0_i32_0 : i32
    scf.if %2 {
      %cst_52 = arith.constant 0.000000e+00 : f32
      %68 = vector.broadcast %cst_52 : f32 to vector<1x128xf32>
      %c0_53 = arith.constant 0 : index
      %c0_54 = arith.constant 0 : index
      %69 = vector.load %arg10[%c0_53, %c0_54] : memref<1x128xf32, #tpu.memory_space<vmem>>, vector<1x128xf32>
      tpu.vector_store %arg10[%c0_53, %c0_54], %68 {strides = array<i32>} : memref<1x128xf32, #tpu.memory_space<vmem>>, vector<1x128xf32>,
      %cst_55 = arith.constant 0.000000e+00 : f32
      %70 = vector.broadcast %cst_55 : f32 to vector<1x128xf32>
      %c0_56 = arith.constant 0 : index
      %c0_57 = arith.constant 0 : index
      %71 = vector.load %arg11[%c0_56, %c0_57] : memref<1x128xf32, #tpu.memory_space<vmem>>, vector<1x128xf32>
      tpu.vector_store %arg11[%c0_56, %c0_57], %70 {strides = array<i32>} : memref<1x128xf32, #tpu.memory_space<vmem>>, vector<1x128xf32>,
      %cst_58 = arith.constant 0.000000e+00 : f32
      %72 = vector.broadcast %cst_58 : f32 to vector<1x128xf32>
      %c0_59 = arith.constant 0 : index
      %c0_60 = arith.constant 0 : index
      %73 = vector.load %arg12[%c0_59, %c0_60] : memref<1x128xf32, #tpu.memory_space<vmem>>, vector<1x128xf32>
      tpu.vector_store %arg12[%c0_59, %c0_60], %72 {strides = array<i32>} : memref<1x128xf32, #tpu.memory_space<vmem>>, vector<1x128xf32>,
      %cst_61 = arith.constant 0.000000e+00 : f32
      %74 = vector.broadcast %cst_61 : f32 to vector<1x128xf32>
      %c0_62 = arith.constant 0 : index
      %c0_63 = arith.constant 0 : index
      %75 = vector.load %arg13[%c0_62, %c0_63] : memref<1x128xf32, #tpu.memory_space<vmem>>, vector<1x128xf32>
      tpu.vector_store %arg13[%c0_62, %c0_63], %74 {strides = array<i32>} : memref<1x128xf32, #tpu.memory_space<vmem>>, vector<1x128xf32>,
      %cst_64 = arith.constant 0.000000e+00 : f32
      %76 = vector.broadcast %cst_64 : f32 to vector<1x128xf32>
      %c0_65 = arith.constant 0 : index
      %c0_66 = arith.constant 0 : index
      %77 = vector.load %arg14[%c0_65, %c0_66] : memref<1x128xf32, #tpu.memory_space<vmem>>, vector<1x128xf32>
      tpu.vector_store %arg14[%c0_65, %c0_66], %76 {strides = array<i32>} : memref<1x128xf32, #tpu.memory_space<vmem>>, vector<1x128xf32>,
      %cst_67 = arith.constant 0.000000e+00 : f32
      %78 = vector.broadcast %cst_67 : f32 to vector<1x128xf32>
      %c0_68 = arith.constant 0 : index
      %c0_69 = arith.constant 0 : index
      %79 = vector.load %arg15[%c0_68, %c0_69] : memref<1x128xf32, #tpu.memory_space<vmem>>, vector<1x128xf32>
      tpu.vector_store %arg15[%c0_68, %c0_69], %78 {strides = array<i32>} : memref<1x128xf32, #tpu.memory_space<vmem>>, vector<1x128xf32>,
    } else {
    }
    %c0 = arith.constant 0 : index
    %c0_1 = arith.constant 0 : index
    %3 = vector.load %arg1[%c0, %c0_1] : memref<8x128xf32, #tpu.memory_space<vmem>>, vector<8x128xf32>
    %c0_2 = arith.constant 0 : index
    %c0_3 = arith.constant 0 : index
    %4 = vector.load %arg2[%c0_2, %c0_3] : memref<8x128xf32, #tpu.memory_space<vmem>>, vector<8x128xf32>
    %c0_4 = arith.constant 0 : index
    %c0_5 = arith.constant 0 : index
    %5 = vector.load %arg3[%c0_4, %c0_5] : memref<128x256xf32, #tpu.memory_space<vmem>>, vector<128x256xf32>
    %cst = arith.constant dense<0.000000e+00> : vector<8x256xf32>
    %6 = tpu.matmul %3, %5, %cst {dimension_numbers = #tpu.dot_dimension_numbers<[1], [0], [0], [1], [0, 0, 1, 1], [], []>} : vector<8x128xf32>, vector<128x256xf32>, vector<8x256xf32> -> vector<8x256xf32>
    %c0_6 = arith.constant 0 : index
    %c0_7 = arith.constant 0 : index
    %7 = vector.load %arg4[%c0_6, %c0_7] : memref<1x256xf32, #tpu.memory_space<vmem>>, vector<1x256xf32>
    %8 = vector.broadcast %7 : vector<1x256xf32> to vector<8x256xf32>
    %9 = arith.addf %6, %8 : vector<8x256xf32>
    %10 = math.tanh %9 : vector<8x256xf32>
    %11 = vector.extract_strided_slice %10 {offsets = [0, 0], sizes = [8, 128], strides = [1, 1]} : vector<8x256xf32> to vector<8x128xf32>
    %12 = vector.extract_strided_slice %10 {offsets = [0, 128], sizes = [8, 128], strides = [1, 1]} : vector<8x256xf32> to vector<8x128xf32>
    %c0_8 = arith.constant 0 : index
    %c0_9 = arith.constant 0 : index
    %13 = vector.load %arg5[%c0_8, %c0_9] : memref<128x128xf32, #tpu.memory_space<vmem>>, vector<128x128xf32>
    %cst_10 = arith.constant dense<0.000000e+00> : vector<8x128xf32>
    %14 = tpu.matmul %11, %13, %cst_10 {dimension_numbers = #tpu.dot_dimension_numbers<[1], [0], [0], [1], [0, 0, 1, 1], [], []>} : vector<8x128xf32>, vector<128x128xf32>, vector<8x128xf32> -> vector<8x128xf32>
    %c0_11 = arith.constant 0 : index
    %c0_12 = arith.constant 0 : index
    %15 = vector.load %arg6[%c0_11, %c0_12] : memref<1x128xf32, #tpu.memory_space<vmem>>, vector<1x128xf32>
    %16 = vector.broadcast %15 : vector<1x128xf32> to vector<8x128xf32>
    %17 = arith.addf %14, %16 : vector<8x128xf32>
    %c0_13 = arith.constant 0 : index
    %c0_14 = arith.constant 0 : index
    %18 = vector.load %arg7[%c0_13, %c0_14] : memref<128x128xf32, #tpu.memory_space<vmem>>, vector<128x128xf32>
    %cst_15 = arith.constant dense<0.000000e+00> : vector<8x128xf32>
    %19 = tpu.matmul %12, %18, %cst_15 {dimension_numbers = #tpu.dot_dimension_numbers<[1], [0], [0], [1], [0, 0, 1, 1], [], []>} : vector<8x128xf32>, vector<128x128xf32>, vector<8x128xf32> -> vector<8x128xf32>
    %c0_16 = arith.constant 0 : index
    %c0_17 = arith.constant 0 : index
    %20 = vector.load %arg8[%c0_16, %c0_17] : memref<1x128xf32, #tpu.memory_space<vmem>>, vector<1x128xf32>
    %21 = vector.broadcast %20 : vector<1x128xf32> to vector<8x128xf32>
    %22 = arith.addf %19, %21 : vector<8x128xf32>
    %23 = math.tanh %22 : vector<8x128xf32>
    %cst_18 = arith.constant 0.000000e+00 : f32
    %24 = vector.broadcast %cst_18 : f32 to vector<8x128xf32>
    %25 = arith.subf %24, %23 : vector<8x128xf32>
    %26 = math.exp %25 : vector<8x128xf32>
    %27 = arith.subf %17, %4 : vector<8x128xf32>
    %28 = arith.mulf %27, %27 : vector<8x128xf32>
    %cst_19 = arith.constant -5.000000e-01 : f32
    %29 = vector.broadcast %cst_19 : f32 to vector<8x128xf32>
    %30 = arith.mulf %29, %28 : vector<8x128xf32>
    %31 = arith.mulf %30, %26 : vector<8x128xf32>
    %32 = arith.mulf %26, %17 : vector<8x128xf32>
    %c0_20 = arith.constant 0 : index
    %c0_21 = arith.constant 0 : index
    %33 = vector.load %arg10[%c0_20, %c0_21] : memref<1x128xf32, #tpu.memory_space<vmem>>, vector<1x128xf32>
    %cst_22 = arith.constant dense<0.000000e+00> : vector<128xf32>
    %34 = vector.multi_reduction <add>, %31, %cst_22 [0] : vector<8x128xf32> to vector<128xf32>
    %35 = vector.shape_cast %34 : vector<128xf32> to vector<1x128xf32>
    %36 = arith.addf %33, %35 : vector<1x128xf32>
    %c0_23 = arith.constant 0 : index
    %c0_24 = arith.constant 0 : index
    %37 = vector.load %arg10[%c0_23, %c0_24] : memref<1x128xf32, #tpu.memory_space<vmem>>, vector<1x128xf32>
    tpu.vector_store %arg10[%c0_23, %c0_24], %36 {strides = array<i32>} : memref<1x128xf32, #tpu.memory_space<vmem>>, vector<1x128xf32>,
    %c0_25 = arith.constant 0 : index
    %c0_26 = arith.constant 0 : index
    %38 = vector.load %arg11[%c0_25, %c0_26] : memref<1x128xf32, #tpu.memory_space<vmem>>, vector<1x128xf32>
    %cst_27 = arith.constant dense<0.000000e+00> : vector<128xf32>
    %39 = vector.multi_reduction <add>, %26, %cst_27 [0] : vector<8x128xf32> to vector<128xf32>
    %40 = vector.shape_cast %39 : vector<128xf32> to vector<1x128xf32>
    %41 = arith.addf %38, %40 : vector<1x128xf32>
    %c0_28 = arith.constant 0 : index
    %c0_29 = arith.constant 0 : index
    %42 = vector.load %arg11[%c0_28, %c0_29] : memref<1x128xf32, #tpu.memory_space<vmem>>, vector<1x128xf32>
    tpu.vector_store %arg11[%c0_28, %c0_29], %41 {strides = array<i32>} : memref<1x128xf32, #tpu.memory_space<vmem>>, vector<1x128xf32>,
    %c0_30 = arith.constant 0 : index
    %c0_31 = arith.constant 0 : index
    %43 = vector.load %arg12[%c0_30, %c0_31] : memref<1x128xf32, #tpu.memory_space<vmem>>, vector<1x128xf32>
    %cst_32 = arith.constant dense<0.000000e+00> : vector<128xf32>
    %44 = vector.multi_reduction <add>, %32, %cst_32 [0] : vector<8x128xf32> to vector<128xf32>
    %45 = vector.shape_cast %44 : vector<128xf32> to vector<1x128xf32>
    %46 = arith.addf %43, %45 : vector<1x128xf32>
    %c0_33 = arith.constant 0 : index
    %c0_34 = arith.constant 0 : index
    %47 = vector.load %arg12[%c0_33, %c0_34] : memref<1x128xf32, #tpu.memory_space<vmem>>, vector<1x128xf32>
    tpu.vector_store %arg12[%c0_33, %c0_34], %46 {strides = array<i32>} : memref<1x128xf32, #tpu.memory_space<vmem>>, vector<1x128xf32>,
    %c0_35 = arith.constant 0 : index
    %c0_36 = arith.constant 0 : index
    %48 = vector.load %arg13[%c0_35, %c0_36] : memref<1x128xf32, #tpu.memory_space<vmem>>, vector<1x128xf32>
    %49 = arith.mulf %32, %17 : vector<8x128xf32>
    %cst_37 = arith.constant dense<0.000000e+00> : vector<128xf32>
    %50 = vector.multi_reduction <add>, %49, %cst_37 [0] : vector<8x128xf32> to vector<128xf32>
    %51 = vector.shape_cast %50 : vector<128xf32> to vector<1x128xf32>
    %52 = arith.addf %48, %51 : vector<1x128xf32>
    %c0_38 = arith.constant 0 : index
    %c0_39 = arith.constant 0 : index
    %53 = vector.load %arg13[%c0_38, %c0_39] : memref<1x128xf32, #tpu.memory_space<vmem>>, vector<1x128xf32>
    tpu.vector_store %arg13[%c0_38, %c0_39], %52 {strides = array<i32>} : memref<1x128xf32, #tpu.memory_space<vmem>>, vector<1x128xf32>,
    %c0_40 = arith.constant 0 : index
    %c0_41 = arith.constant 0 : index
    %54 = vector.load %arg14[%c0_40, %c0_41] : memref<1x128xf32, #tpu.memory_space<vmem>>, vector<1x128xf32>
    %cst_42 = arith.constant dense<0.000000e+00> : vector<128xf32>
    %55 = vector.multi_reduction <add>, %17, %cst_42 [0] : vector<8x128xf32> to vector<128xf32>
    %56 = vector.shape_cast %55 : vector<128xf32> to vector<1x128xf32>
    %57 = arith.addf %54, %56 : vector<1x128xf32>
    %c0_43 = arith.constant 0 : index
    %c0_44 = arith.constant 0 : index
    %58 = vector.load %arg14[%c0_43, %c0_44] : memref<1x128xf32, #tpu.memory_space<vmem>>, vector<1x128xf32>
    tpu.vector_store %arg14[%c0_43, %c0_44], %57 {strides = array<i32>} : memref<1x128xf32, #tpu.memory_space<vmem>>, vector<1x128xf32>,
    %c0_45 = arith.constant 0 : index
    %c0_46 = arith.constant 0 : index
    %59 = vector.load %arg15[%c0_45, %c0_46] : memref<1x128xf32, #tpu.memory_space<vmem>>, vector<1x128xf32>
    %60 = arith.mulf %17, %17 : vector<8x128xf32>
    %cst_47 = arith.constant dense<0.000000e+00> : vector<128xf32>
    %61 = vector.multi_reduction <add>, %60, %cst_47 [0] : vector<8x128xf32> to vector<128xf32>
    %62 = vector.shape_cast %61 : vector<128xf32> to vector<1x128xf32>
    %63 = arith.addf %59, %62 : vector<1x128xf32>
    %c0_48 = arith.constant 0 : index
    %c0_49 = arith.constant 0 : index
    %64 = vector.load %arg15[%c0_48, %c0_49] : memref<1x128xf32, #tpu.memory_space<vmem>>, vector<1x128xf32>
    tpu.vector_store %arg15[%c0_48, %c0_49], %63 {strides = array<i32>} : memref<1x128xf32, #tpu.memory_space<vmem>>, vector<1x128xf32>,
    %c0_i32_50 = arith.constant 0 : i32
    %65 = arith.cmpi eq, %arg0, %c0_i32_50 : i32
    %66 = arith.extui %65 : i1 to i32
    %c0_i32_51 = arith.constant 0 : i32
    %67 = arith.cmpi ne, %66, %c0_i32_51 : i32
    scf.if %67 {
      %c0_52 = arith.constant 0 : index
      %c0_53 = arith.constant 0 : index
      %68 = vector.load %arg14[%c0_52, %c0_53] : memref<1x128xf32, #tpu.memory_space<vmem>>, vector<1x128xf32>
      %cst_54 = arith.constant 1.250000e-01 : f32
      %69 = vector.broadcast %cst_54 : f32 to vector<1x128xf32>
      %70 = arith.mulf %68, %69 : vector<1x128xf32>
      %c0_55 = arith.constant 0 : index
      %c0_56 = arith.constant 0 : index
      %71 = vector.load %arg15[%c0_55, %c0_56] : memref<1x128xf32, #tpu.memory_space<vmem>>, vector<1x128xf32>
      %cst_57 = arith.constant 1.250000e-01 : f32
      %72 = vector.broadcast %cst_57 : f32 to vector<1x128xf32>
      %73 = arith.mulf %71, %72 : vector<1x128xf32>
      %c0_58 = arith.constant 0 : index
      %c0_59 = arith.constant 0 : index
      %74 = vector.load %arg13[%c0_58, %c0_59] : memref<1x128xf32, #tpu.memory_space<vmem>>, vector<1x128xf32>
      %cst_60 = arith.constant 2.000000e+00 : f32
      %75 = vector.broadcast %cst_60 : f32 to vector<1x128xf32>
      %76 = arith.mulf %75, %70 : vector<1x128xf32>
      %c0_61 = arith.constant 0 : index
      %c0_62 = arith.constant 0 : index
      %77 = vector.load %arg12[%c0_61, %c0_62] : memref<1x128xf32, #tpu.memory_space<vmem>>, vector<1x128xf32>
      %78 = arith.mulf %76, %77 : vector<1x128xf32>
      %79 = arith.subf %74, %78 : vector<1x128xf32>
      %c0_63 = arith.constant 0 : index
      %c0_64 = arith.constant 0 : index
      %80 = vector.load %arg11[%c0_63, %c0_64] : memref<1x128xf32, #tpu.memory_space<vmem>>, vector<1x128xf32>
      %81 = arith.mulf %73, %80 : vector<1x128xf32>
      %82 = arith.addf %79, %81 : vector<1x128xf32>
      %cst_65 = arith.constant -5.000000e-01 : f32
      %83 = vector.broadcast %cst_65 : f32 to vector<1x128xf32>
      %84 = arith.mulf %83, %82 : vector<1x128xf32>
      %c0_66 = arith.constant 0 : index
      %c0_67 = arith.constant 0 : index
      %85 = vector.load %arg10[%c0_66, %c0_67] : memref<1x128xf32, #tpu.memory_space<vmem>>, vector<1x128xf32>
      %cst_68 = arith.constant dense<0.000000e+00> : vector<1xf32>
      %86 = vector.multi_reduction <add>, %85, %cst_68 [1] : vector<1x128xf32> to vector<1xf32>
      %87 = vector.shape_cast %86 : vector<1xf32> to vector<1x1xf32>
      %cst_69 = arith.constant dense<0.000000e+00> : vector<1xf32>
      %88 = vector.multi_reduction <add>, %84, %cst_69 [1] : vector<1x128xf32> to vector<1xf32>
      %89 = vector.shape_cast %88 : vector<1xf32> to vector<1x1xf32>
      %cst_70 = arith.constant 1.250000e-01 : f32
      %90 = vector.broadcast %cst_70 : f32 to vector<1x1xf32>
      %91 = arith.mulf %87, %90 : vector<1x1xf32>
      %92 = arith.subf %87, %89 : vector<1x1xf32>
      %cst_71 = arith.constant 1.250000e-01 : f32
      %93 = vector.broadcast %cst_71 : f32 to vector<1x1xf32>
      %94 = arith.mulf %92, %93 : vector<1x1xf32>
      %95 = tpu.iota {dimensions = array<i32: 1>} : vector<1x128xi32>
      %c0_i32_72 = arith.constant 0 : i32
      %96 = vector.broadcast %c0_i32_72 : i32 to vector<1x128xi32>
      %97 = arith.cmpi eq, %95, %96 : vector<1x128xi32>
      %c1_i32 = arith.constant 1 : i32
      %98 = vector.broadcast %c1_i32 : i32 to vector<1x128xi32>
      %99 = arith.cmpi eq, %95, %98 : vector<1x128xi32>
      %cst_73 = arith.constant 0.000000e+00 : f32
      %100 = vector.shape_cast %94 : vector<1x1xf32> to vector<1x1xf32>
      %101 = vector.broadcast %100 : vector<1x1xf32> to vector<1x128xf32>
      %102 = vector.broadcast %cst_73 : f32 to vector<1x128xf32>
      %103 = arith.select %99, %101, %102 : vector<1x128xi1>, vector<1x128xf32>
      %104 = vector.shape_cast %91 : vector<1x1xf32> to vector<1x1xf32>
      %105 = vector.broadcast %104 : vector<1x1xf32> to vector<1x128xf32>
      %106 = arith.select %97, %105, %103 : vector<1x128xi1>, vector<1x128xf32>
      %c0_74 = arith.constant 0 : index
      %c0_75 = arith.constant 0 : index
      %107 = vector.load %arg9[%c0_74, %c0_75] : memref<1x128xf32, #tpu.memory_space<vmem>>, vector<1x128xf32>
      tpu.vector_store %arg9[%c0_74, %c0_75], %106 {strides = array<i32>} : memref<1x128xf32, #tpu.memory_space<vmem>>, vector<1x128xf32>,
    } else {
    }
    return
  }
  func.func @transform_0(%arg0: i32) -> (i32, i32) {
    %c0_i32 = arith.constant 0 : i32
    %c0_i32_0 = arith.constant 0 : i32
    return %arg0, %c0_i32 : i32, i32
  }
  func.func @transform_1(%arg0: i32) -> (i32, i32) {
    %c0_i32 = arith.constant 0 : i32
    %c0_i32_0 = arith.constant 0 : i32
    return %arg0, %c0_i32 : i32, i32
  }
  func.func @transform_2(%arg0: i32) -> (i32, i32) {
    %c0_i32 = arith.constant 0 : i32
    %c0_i32_0 = arith.constant 0 : i32
    %c0_i32_1 = arith.constant 0 : i32
    return %c0_i32, %c0_i32_0 : i32, i32
  }
  func.func @transform_3(%arg0: i32) -> (i32, i32) {
    %c0_i32 = arith.constant 0 : i32
    %c0_i32_0 = arith.constant 0 : i32
    %c0_i32_1 = arith.constant 0 : i32
    return %c0_i32, %c0_i32_0 : i32, i32
  }
  func.func @transform_4(%arg0: i32) -> (i32, i32) {
    %c0_i32 = arith.constant 0 : i32
    %c0_i32_0 = arith.constant 0 : i32
    %c0_i32_1 = arith.constant 0 : i32
    return %c0_i32, %c0_i32_0 : i32, i32
  }
  func.func @transform_5(%arg0: i32) -> (i32, i32) {
    %c0_i32 = arith.constant 0 : i32
    %c0_i32_0 = arith.constant 0 : i32
    %c0_i32_1 = arith.constant 0 : i32
    return %c0_i32, %c0_i32_0 : i32, i32
  }
  func.func @transform_6(%arg0: i32) -> (i32, i32) {
    %c0_i32 = arith.constant 0 : i32
    %c0_i32_0 = arith.constant 0 : i32
    %c0_i32_1 = arith.constant 0 : i32
    return %c0_i32, %c0_i32_0 : i32, i32
  }
  func.func @transform_7(%arg0: i32) -> (i32, i32) {
    %c0_i32 = arith.constant 0 : i32
    %c0_i32_0 = arith.constant 0 : i32
    %c0_i32_1 = arith.constant 0 : i32
    return %c0_i32, %c0_i32_0 : i32, i32
  }
  func.func @transform_8(%arg0: i32) -> (i32, i32) {
    %c0_i32 = arith.constant 0 : i32
    %c0_i32_0 = arith.constant 0 : i32
    %c0_i32_1 = arith.constant 0 : i32
    return %c0_i32, %c0_i32_0 : i32, i32
  }
}

</mosaic_0001>

<bundles_post_ra>
// kernel: tpu_custom_call.1
= control target key start
LH: loop header
LB: loop body
LE: loop exit
PB: predicated region body
PF: predicated region fallthrough
CT: control target
= control target key end

     0   :  { %13 = vsyncpa [#allocation9], 0  ;;  %s1058_s0 = inlined_call_operand.hbm [shape: f32[8,128], index: 0, kind: input, shape index: {}]   ;;  %s1059_s1 = inlined_call_operand.hbm [shape: f32[8,128], index: 1, kind: input, shape index: {}]   ;;  %s1060_s2 = inlined_call_operand.hbm [shape: f32[128,256], index: 2, kind: input, shape index: {}]   ;;  %s1061_s3 = inlined_call_operand.vmem [shape: f32[1,256], index: 3, kind: input, shape index: {}]   ;;  %s1062_s4 = inlined_call_operand.hbm [shape: f32[128,128], index: 4, kind: input, shape index: {}]   ;;  %s1063_s5 = inlined_call_operand.vmem [shape: f32[1,128], index: 5, kind: input, shape index: {}]   ;;  %s1064_s6 = inlined_call_operand.hbm [shape: f32[128,128], index: 6, kind: input, shape index: {}]   ;;  %s1065_s7 = inlined_call_operand.vmem [shape: f32[1,128], index: 7, kind: input, shape index: {}]   ;;  %s1066_s8 = inlined_call_operand.hbm [shape: f32[1,128], index: 8, kind: output, shape index: {}]  }
   0x1   :  { %14 = vsyncpa [#allocation12], 0 }
   0x2   :  { %15 = vsyncpa [#allocation15], 0 }
   0x3   :  { %16 = vsyncpa [#allocation10], 0  ;;  %s872_s27 = smov [#allocation11]   ;;  %s873_s29 = smov [#allocation14]  }
   0x4   :  { %s33_s28 = sshll.u32 %s872_s27, 4  ;;  %s56_s30 = sshll.u32 %s873_s29, 4  ;;  %s34_s28 = int_to_ptr.vmem [resolvable:$true] %s33_s28  ;;  %s930_s30 = int_to_ptr.vmem [resolvable:$true] %s56_s30 }
   0x5   :  { %s732_s11 = scalar_lea.hbm %s1059_s1, 128 }
   0x6   :  { %p733_p0 = scmp.ne.s32.totalorder %s1059_s1, %s732_s11  ;;  %p736_p1 = scmp.lt.u32.totalorder %s732_s11, %s1059_s1 }
   0x8   :  { %p738_p2 = pnand %p736_p1, %p733_p0 }
   0xa   :  { %741 = shalt.err (!%p738_p2)
}
   0xb   :  { %s742_s16 = scalar_lea.vmem %s34_s28, 128  ;;  %p747_p4 = scmp.lt.s32.totalorder %s34_s28, %s34_s28 }
   0xc   :  { %p743_p3 = scmp.ne.s32.totalorder %s34_s28, %s742_s16  ;;  %p748_p5 = scmp.lt.s32.totalorder %s742_s16, %s742_s16 }
   0xe   :  { %p749_p6 = por %p748_p5, %p747_p4 }
  0x10   :  { %p750_p7 = pnand %p749_p6, %p743_p3 }
  0x12   :  { %753 = shalt.err (!%p750_p7)
}
  0x13   :  { %36 = dma.hbm_to_vmem [thread:$0]  %s1059_s1, 128, %s34_s28, [#allocation12]  }
  0x14   :  { %s754_s21 = scalar_lea.hbm %s1062_s4, 2048 }
  0x15   :  { %p755_p8 = scmp.ne.s32.totalorder %s1062_s4, %s754_s21  ;;  %p758_p9 = scmp.lt.u32.totalorder %s754_s21, %s1062_s4 }
  0x17   :  { %p760_p10 = pnand %p758_p9, %p755_p8 }
  0x19   :  { %763 = shalt.err (!%p760_p10)
}
  0x1a   :  { %s764_s26 = scalar_lea.vmem %s930_s30, 2048  ;;  %p769_p12 = scmp.lt.s32.totalorder %s930_s30, %s930_s30 }
  0x1b   :  { %p765_p11 = scmp.ne.s32.totalorder %s930_s30, %s764_s26  ;;  %p770_p13 = scmp.lt.s32.totalorder %s764_s26, %s764_s26 }
  0x1d   :  { %p771_p0 = por %p770_p13, %p769_p12 }
  0x1f   :  { %p772_p1 = pnand %p771_p0, %p765_p11 }
  0x21   :  { %775 = shalt.err (!%p772_p1)
}
  0x22   :  { %s874_s1 = smov 128   ;;  %s875_s27 = smov 8  }
  0x23   :  { %62 = dma.hbm_to_vmem [thread:$0]  %s1062_s4, 2048, %s930_s30, [#allocation15], %s874_s1, %s874_s1, %s875_s27  }
  0x24   :  { %s876_s9 = smov [#allocation8]   ;;  %s877_s11 = smov [#allocation13]  }
  0x25   :  { %s23_s10 = sshll.u32 %s876_s9, 4  ;;  %s42_s12 = sshll.u32 %s877_s11, 4  ;;  %s24_s10 = int_to_ptr.vmem [resolvable:$true] %s23_s10  ;;  %s964_s12 = int_to_ptr.vmem [resolvable:$true] %s42_s12 }
  0x26   :  { %s776_s15 = scalar_lea.hbm %s1058_s0, 128 }
  0x27   :  { %p777_p2 = scmp.ne.s32.totalorder %s1058_s0, %s776_s15  ;;  %p780_p3 = scmp.lt.u32.totalorder %s776_s15, %s1058_s0 }
  0x29   :  { %p782_p4 = pnand %p780_p3, %p777_p2 }
  0x2b   :  { %785 = shalt.err (!%p782_p4)
}
  0x2c   :  { %s786_s4 = scalar_lea.vmem %s24_s10, 128  ;;  %p791_p6 = scmp.lt.s32.totalorder %s24_s10, %s24_s10 }
  0x2d   :  { %p787_p5 = scmp.ne.s32.totalorder %s24_s10, %s786_s4  ;;  %p792_p7 = scmp.lt.s32.totalorder %s786_s4, %s786_s4 }
  0x2f   :  { %p793_p8 = por %p792_p7, %p791_p6 }
  0x31   :  { %p794_p9 = pnand %p793_p8, %p787_p5 }
  0x33   :  { %797 = shalt.err (!%p794_p9)
}
  0x34   :  { %26 = dma.hbm_to_vmem [thread:$0]  %s1058_s0, 128, %s24_s10, [#allocation9]  }
  0x35   :  { %s798_s23 = scalar_lea.hbm %s1060_s2, 4096 }
  0x36   :  { %p799_p10 = scmp.ne.s32.totalorder %s1060_s2, %s798_s23  ;;  %p802_p11 = scmp.lt.u32.totalorder %s798_s23, %s1060_s2 }
  0x38   :  { %p804_p12 = pnand %p802_p11, %p799_p10 }
  0x3a   :  { %807 = shalt.err (!%p804_p12)
}
  0x3b   :  { %s808_s29 = scalar_lea.vmem %s964_s12, 4096  ;;  %p813_p0 = scmp.lt.s32.totalorder %s964_s12, %s964_s12 }
  0x3c   :  { %p809_p13 = scmp.ne.s32.totalorder %s964_s12, %s808_s29  ;;  %p814_p1 = scmp.lt.s32.totalorder %s808_s29, %s808_s29 }
  0x3e   :  { %p815_p2 = por %p814_p1, %p813_p0 }
  0x40   :  { %p816_p3 = pnand %p815_p2, %p809_p13 }
  0x42   :  { %819 = shalt.err (!%p816_p3)
}
  0x43   :  { %s878_s0 = smov 256   ;;  %s879_s9 = smov 16  }
  0x44   :  { %48 = dma.hbm_to_vmem [thread:$0]  %s1060_s2, 4096, %s964_s12, [#allocation12], %s878_s0, %s878_s0, %s879_s9  }
  0x45   :  { %s880_s13 = smov [#allocation16]   ;;  %s820_s17 = scalar_lea.hbm %s1064_s6, 2048 }
  0x46   :  { %s70_s14 = sshll.u32 %s880_s13, 4  ;;  %p821_p4 = scmp.ne.s32.totalorder %s1064_s6, %s820_s17  ;;  %s71_s14 = int_to_ptr.vmem [resolvable:$true] %s70_s14 }
  0x47   :  { %p824_p5 = scmp.lt.u32.totalorder %s820_s17, %s1064_s6 }
  0x49   :  { %p826_p6 = pnand %p824_p5, %p821_p4 }
  0x4b   :  { %829 = shalt.err (!%p826_p6)
}
  0x4c   :  { %s830_s20 = scalar_lea.vmem %s71_s14, 2048  ;;  %p835_p8 = scmp.lt.s32.totalorder %s71_s14, %s71_s14 }
  0x4d   :  { %p831_p7 = scmp.ne.s32.totalorder %s71_s14, %s830_s20  ;;  %p836_p9 = scmp.lt.s32.totalorder %s830_s20, %s830_s20 }
  0x4f   :  { %p837_p10 = por %p836_p9, %p835_p8 }
  0x51   :  { %p838_p11 = pnand %p837_p10, %p831_p7 }
  0x53   :  { %841 = shalt.err (!%p838_p11)
}
  0x54   :  { %76 = dma.hbm_to_vmem [thread:$0]  %s1064_s6, 2048, %s71_s14, [#allocation15], %s874_s1, %s874_s1, %s875_s27  }
  0x55   :  { %864 = dma.done.wait [#allocation9], 128  }
  0x56   :  { %865 = vsyncadd [#allocation9], 4294967168 }
  0x57   :  { %866 = dma.done.wait [#allocation12], 4224  }
  0x58   :  { %867 = vsyncadd [#allocation12], 4294963072 }
  0x59   :  { %868 = dma.done.wait [#allocation15], 4096  }
  0x5a   :  { %869 = vsyncadd [#allocation15], 4294963200  ;;  %v881_v0 = vmov 0.0   ;;  %v882_v1 = vmov 0.0|0.0   ;;  %v107_v2 = vld [vmem:[#allocation13 + $0x8] sm:$0xff]  ;;  %v109_v3 = vld [vmem:[#allocation13 + $0x18] sm:$0xff] }
  0x5b   :  { %99 = vst [vmem:[#allocation3] sm:$0x1] %v881_v0  ;;  %100 = vst [vmem:[#allocation4] sm:$0x1] %v881_v0  ;;  %214 = vmatprep.mubr.f32.mxu0 %v881_v0  ;;  %663 = vmatprep.subr.bf16.mxu1 %v882_v1  ;;  %v106_v4 = vld [vmem:[#allocation13] sm:$0xff]  ;;  %v631_v5 = vpack.c.bf16 %v109_v3, %v107_v2  ;;  %v108_v6 = vld [vmem:[#allocation13 + $0x10] sm:$0xff] }
  0x5c   :  { %101 = vst [vmem:[#allocation5] sm:$0x1] %v881_v0  ;;  %98 = vst [vmem:[#allocation2] sm:$0x1] %v881_v0  ;;  %v111_v7 = vld [vmem:[#allocation13 + $0x28] sm:$0xff]  ;;  %v113_v8 = vld [vmem:[#allocation13 + $0x38] sm:$0xff]  ;;  %v633_v9 = vpack.c.bf16 %v108_v6, %v106_v4 }
  0x5d   :  { %102 = vst [vmem:[#allocation6] sm:$0x1] %v881_v0  ;;  %103 = vst [vmem:[#allocation7] sm:$0x1] %v881_v0  ;;  %v635_v10 = vpack.c.bf16 %v113_v8, %v111_v7  ;;  %v110_v11 = vld [vmem:[#allocation13 + $0x20] sm:$0xff]  ;;  %v112_v12 = vld [vmem:[#allocation13 + $0x30] sm:$0xff]  ;;  %632 = vmatprep.subr.bf16.mxu0 %v631_v5 }
  0x5e   :  { %v115_v13 = vld [vmem:[#allocation13 + $0x48] sm:$0xff]  ;;  %v117_v14 = vld [vmem:[#allocation13 + $0x58] sm:$0xff]  ;;  %634 = vmatpush1.bf16.msra.mxu0 %v633_v9  ;;  %v637_v15 = vpack.c.bf16 %v112_v12, %v110_v11  ;;  %v114_v17 = vld [vmem:[#allocation13 + $0x40] sm:$0xff]  ;;  %vm883_vm0 = vmmov 0   ;;  %vm491_vm1 = vcmask 1040384  }
  0x5f   :  { %636 = vmatprep.subr.bf16.mxu0 %v635_v10  ;;  %v639_v16 = vpack.c.bf16 %v117_v14, %v115_v13  ;;  %v116_v18 = vld [vmem:[#allocation13 + $0x50] sm:$0xff]  ;;  %v119_v19 = vld [vmem:[#allocation13 + $0x68] sm:$0xff]  ;;  %v121_v20 = vld [vmem:[#allocation13 + $0x78] sm:$0xff]  ;;  %593 = vmatprep.mubr.msk.f32.mxu1 %vm883_vm0, %v881_v0 }
  0x60   :  { %v641_v21 = vpack.c.bf16 %v116_v18, %v114_v17  ;;  %v643_v22 = vpack.c.bf16 %v121_v20, %v119_v19  ;;  %v118_v23 = vld [vmem:[#allocation13 + $0x60] sm:$0xff]  ;;  %v120_v24 = vld [vmem:[#allocation13 + $0x70] sm:$0xff]  ;;  %v123_v25 = vld [vmem:[#allocation13 + $0x88] sm:$0xff] }
  0x61   :  { %v125_v26 = vld [vmem:[#allocation13 + $0x98] sm:$0xff]  ;;  %v223_v27 = vld [vmem:[#allocation14] sm:$0xff]  ;;  %v224_v28 = vld [vmem:[#allocation14 + $0x8] sm:$0xff]  ;;  %v645_v29 = vpack.c.bf16 %v120_v24, %v118_v23 }
  0x62   :  { %638 = vmatpush1.bf16.msra.mxu0 %v637_v15  ;;  %v664_v30 = vpack.c.bf16 %v224_v28, %v223_v27  ;;  %v225_v31 = vld [vmem:[#allocation14 + $0x10] sm:$0xff]  ;;  %v226_v32 = vld [vmem:[#allocation14 + $0x18] sm:$0xff]  ;;  %v647_v33 = vpack.c.bf16 %v125_v26, %v123_v25  ;;  %v122_v34 = vld [vmem:[#allocation13 + $0x80] sm:$0xff] }
  0x63   :  { %640 = vmatprep.subr.bf16.mxu0 %v639_v16  ;;  %v124_v35 = vld [vmem:[#allocation13 + $0x90] sm:$0xff]  ;;  %v127_v36 = vld [vmem:[#allocation13 + $0xa8] sm:$0xff]  ;;  %v129_v37 = vld [vmem:[#allocation13 + $0xb8] sm:$0xff]  ;;  %v667_v38 = vpack.c.bf16 %v226_v32, %v225_v31 }
  0x64   :  { %665 = vmatpush3.bf16.msra.mxu1 %v664_v30  ;;  %v227_v39 = vld [vmem:[#allocation14 + $0x20] sm:$0xff]  ;;  %v228_v40 = vld [vmem:[#allocation14 + $0x28] sm:$0xff]  ;;  %v649_v41 = vpack.c.bf16 %v124_v35, %v122_v34  ;;  %v651_v42 = vpack.c.bf16 %v129_v37, %v127_v36  ;;  %v128_v44 = vld [vmem:[#allocation13 + $0xb0] sm:$0xff]  ;;  %v140_v37 = vlaneseq }
  0x65   :  { %666 = vmatprep.subr.bf16.mxu1 %v882_v1  ;;  %v126_v43 = vld [vmem:[#allocation13 + $0xa0] sm:$0xff]  ;;  %v131_v45 = vld [vmem:[#allocation13 + $0xc8] sm:$0xff]  ;;  %v133_v46 = vld [vmem:[#allocation13 + $0xd8] sm:$0xff]  ;;  %v670_v47 = vpack.c.bf16 %v228_v40, %v227_v39 }
  0x66   :  { %642 = vmatpush1.bf16.msra.mxu0 %v641_v21  ;;  %v229_v48 = vld [vmem:[#allocation14 + $0x30] sm:$0xff]  ;;  %v230_v49 = vld [vmem:[#allocation14 + $0x38] sm:$0xff]  ;;  %v653_v50 = vpack.c.bf16 %v128_v44, %v126_v43  ;;  %v655_v51 = vpack.c.bf16 %v133_v46, %v131_v45  ;;  %v130_v52 = vld [vmem:[#allocation13 + $0xc0] sm:$0xff] }
  0x67   :  { %644 = vmatprep.subr.bf16.mxu0 %v643_v22  ;;  %v132_v53 = vld [vmem:[#allocation13 + $0xd0] sm:$0xff]  ;;  %v135_v54 = vld [vmem:[#allocation13 + $0xe8] sm:$0xff]  ;;  %v137_v55 = vld [vmem:[#allocation13 + $0xf8] sm:$0xff]  ;;  %v673_v56 = vpack.c.bf16 %v230_v49, %v229_v48 }
  0x68   :  { %668 = vmatpush3.bf16.msra.mxu1 %v667_v38  ;;  %v231_v57 = vld [vmem:[#allocation14 + $0x40] sm:$0xff]  ;;  %v232_v58 = vld [vmem:[#allocation14 + $0x48] sm:$0xff]  ;;  %v657_v59 = vpack.c.bf16 %v132_v53, %v130_v52  ;;  %v659_v60 = vpack.c.bf16 %v137_v55, %v135_v54  ;;  %v136_v62 = vld [vmem:[#allocation13 + $0xf0] sm:$0xff]  ;;  %v141_v38 = vshrl.u32 %v140_v37, 7 }
  0x69   :  { %669 = vmatprep.subr.bf16.mxu1 %v882_v1  ;;  %v134_v61 = vld [vmem:[#allocation13 + $0xe0] sm:$0xff]  ;;  %v676_v63 = vpack.c.bf16 %v232_v58, %v231_v57  ;;  %v317_v4 = vld [vmem:[#allocation16 + $0x8] sm:$0xff]  ;;  %v104_v5 = vld [vmem:[#allocation8] sm:$0xff] }
  0x6a   :  { %646 = vmatpush1.bf16.msra.mxu0 %v645_v29  ;;  %v661_v2 = vpack.c.bf16 %v136_v62, %v134_v61  ;;  %v316_v3 = vld [vmem:[#allocation16] sm:$0xff]  ;;  %v318_v7 = vld [vmem:[#allocation16 + $0x10] sm:$0xff]  ;;  %v319_v8 = vld [vmem:[#allocation16 + $0x18] sm:$0xff]  ;;  %v142_v39 = vsub.s32 0, %v141_v38 }
  0x6b   :  { %648 = vmatprep.subr.bf16.mxu0 %v647_v33  ;;  %v688_v6 = vpack.c.bf16 %v317_v4, %v316_v3  ;;  %v691_v9 = vpack.c.bf16 %v319_v8, %v318_v7  ;;  %v320_v10 = vld [vmem:[#allocation16 + $0x20] sm:$0xff]  ;;  %v321_v11 = vld [vmem:[#allocation16 + $0x28] sm:$0xff]  ;;  %v322_v13 = vld [vmem:[#allocation16 + $0x30] sm:$0xff] }
  0x6c   :  { %671 = vmatpush3.bf16.msra.mxu1 %v670_v47  ;;  %v694_v12 = vpack.c.bf16 %v321_v11, %v320_v10  ;;  %v323_v14 = vld [vmem:[#allocation16 + $0x38] sm:$0xff]  ;;  %v324_v16 = vld [vmem:[#allocation16 + $0x40] sm:$0xff]  ;;  %v325_v17 = vld [vmem:[#allocation16 + $0x48] sm:$0xff] }
  0x6d   :  { %672 = vmatprep.subr.bf16.mxu1 %v882_v1  ;;  %v697_v15 = vpack.c.bf16 %v323_v14, %v322_v13  ;;  %v700_v18 = vpack.c.bf16 %v325_v17, %v324_v16  ;;  %v233_v19 = vld [vmem:[#allocation14 + $0x50] sm:$0xff]  ;;  %v234_v20 = vld [vmem:[#allocation14 + $0x58] sm:$0xff]  ;;  %v235_v25 = vld [vmem:[#allocation14 + $0x60] sm:$0xff] }
  0x6e   :  { %650 = vmatpush1.bf16.msra.mxu0 %v649_v41  ;;  %v679_v21 = vpack.c.bf16 %v234_v20, %v233_v19  ;;  %v326_v22 = vld [vmem:[#allocation16 + $0x50] sm:$0xff]  ;;  %v327_v23 = vld [vmem:[#allocation16 + $0x58] sm:$0xff]  ;;  %v236_v26 = vld [vmem:[#allocation14 + $0x68] sm:$0xff]  ;;  %v146_v41 = vsub.s32 1, %v141_v38 }
  0x6f   :  { %652 = vmatprep.subr.bf16.mxu0 %v651_v42  ;;  %v703_v24 = vpack.c.bf16 %v327_v23, %v326_v22  ;;  %v328_v27 = vld [vmem:[#allocation16 + $0x60] sm:$0xff]  ;;  %v682_v28 = vpack.c.bf16 %v236_v26, %v235_v25  ;;  %v329_v29 = vld [vmem:[#allocation16 + $0x68] sm:$0xff]  ;;  %v237_v30 = vld [vmem:[#allocation14 + $0x70] sm:$0xff] }
  0x70   :  { %674 = vmatpush3.bf16.msra.mxu1 %v673_v56  ;;  %v238_v31 = vld [vmem:[#allocation14 + $0x78] sm:$0xff]  ;;  %v706_v32 = vpack.c.bf16 %v329_v29, %v328_v27  ;;  %v330_v33 = vld [vmem:[#allocation16 + $0x70] sm:$0xff]  ;;  %v138_v40 = vld [vmem:[%s1061_s3] sm:$0x3]  ;;  %s884_s3 = smov [#allocation17]  }
  0x71   :  { %675 = vmatprep.subr.bf16.mxu1 %v882_v1  ;;  %v331_v34 = vld [vmem:[#allocation16 + $0x78] sm:$0xff]  ;;  %v685_v35 = vpack.c.bf16 %v238_v31, %v237_v30  ;;  %v147_v42 = vrot.slane %v138_v40, %v146_v41  ;;  %v525_v48 = vld [vmem:[%s1063_s5] ss:$0 sm:$0xff]  ;;  %v455_v4 = vld [vmem:[#allocation6] sm:$0x1]  ;;  %s514_s5 = sshll.u32 %s884_s3, 4  ;;  %s515_s5 = int_to_ptr.vmem [resolvable:$true] %s514_s5 }
  0x72   :  { %654 = vmatpush1.bf16.msra.mxu0 %v653_v50  ;;  %v709_v36 = vpack.c.bf16 %v331_v34, %v330_v33  ;;  %v526_v49 = vld [vmem:[%s1065_s7] ss:$0 sm:$0xff]  ;;  %v464_v8 = vld [vmem:[#allocation7] sm:$0x1]  ;;  %s842_s7 = scalar_lea.vmem %s515_s5, 16  ;;  %s846_s24 = scalar_lea.vmem %s515_s5, 32 }
  0x73   :  { %656 = vmatprep.subr.bf16.mxu0 %v655_v51  ;;  %p843_p12 = scmp.ne.s32.totalorder %s515_s5, %s842_s7  ;;  %p847_p13 = scmp.lt.s32.totalorder %s515_s5, %s515_s5 }
  0x74   :  { %677 = vmatpush3.bf16.msra.mxu1 %v676_v63  ;;  %p848_p0 = scmp.lt.s32.totalorder %s846_s24, %s842_s7 }
  0x75   :  { %678 = vmatprep.subr.bf16.mxu1 %v882_v1 }
  0x76   :  { %658 = vmatpush1.bf16.msra.mxu0 %v657_v59  ;;  %p849_p1 = por %p848_p0, %p847_p13 }
  0x77   :  { %660 = vmatprep.subr.bf16.mxu0 %v659_v60 }
  0x78   :  { %680 = vmatpush3.bf16.msra.mxu1 %v679_v21  ;;  %p850_p2 = pnand %p849_p1, %p843_p12 }
  0x79   :  { %681 = vmatprep.subr.bf16.mxu1 %v882_v1 }
  0x7a   :  { %662 = vmatpush1.bf16.msra.mxu0 %v661_v2 }
  0x7b   :  { %687 = vmatprep.subr.bf16.mxu0 %v882_v1 }
  0x7c   :  { %683 = vmatpush3.bf16.msra.mxu1 %v682_v28 }
  0x7d   :  { %215 = vmatmul.mubr.f32.vlgmr.msra.gmra.mrb[0].mxu0 %v104_v5  ;;  %684 = vmatprep.subr.bf16.mxu1 %v882_v1 }
  0x7e   :  { %689 = vmatpush3.bf16.msra.mxu0 %v688_v6  ;;  %628 = vmatprep.mubr.msk.f32.mxu0 %vm883_vm0, %v881_v0  ;;  %v143_v0 = vrot.slane %v138_v40, %v142_v39  ;;  %v427_v39 = vld [vmem:[#allocation3] sm:$0x1] }
  0x7f   :  { %690 = vmatprep.subr.bf16.mxu0 %v882_v1 }
  0x80   :  { %686 = vmatpush3.bf16.msra.mxu1 %v685_v35 }
  0x82   :  { %692 = vmatpush3.bf16.msra.mxu0 %v691_v9 }
  0x83   :  { %693 = vmatprep.subr.bf16.mxu0 %v882_v1 }
  0x86   :  { %695 = vmatpush3.bf16.msra.mxu0 %v694_v12  ;;  %v105_v12 = vld [vmem:[#allocation11] sm:$0xff] }
  0x87   :  { %696 = vmatprep.subr.bf16.mxu0 %v882_v1 }
  0x8a   :  { %698 = vmatpush3.bf16.msra.mxu0 %v697_v15 }
  0x8b   :  { %699 = vmatprep.subr.bf16.mxu0 %v882_v1 }
  0x8e   :  { %701 = vmatpush3.bf16.msra.mxu0 %v700_v18 }
  0x8f   :  { %702 = vmatprep.subr.bf16.mxu0 %v882_v1 }
  0x92   :  { %704 = vmatpush3.bf16.msra.mxu0 %v703_v24 }
  0x93   :  { %705 = vmatprep.subr.bf16.mxu0 %v882_v1 }
  0x96   :  { %707 = vmatpush3.bf16.msra.mxu0 %v706_v32 }
  0x97   :  { %708 = vmatprep.subr.bf16.mxu0 %v882_v1 }
  0x9a   :  { %710 = vmatpush3.bf16.msra.mxu0 %v709_v36 }
 0x150   :  { %v216_v43 = vpop.f32.mrb[0].mxu0 }
 0x151   :  { %v217_v44 = vadd.f32 %v216_v43, %v143_v0  ;;  %v218_v45 = vpop.f32.mrb[1].mxu0  ;;  %v418_v43 = vld [vmem:[#allocation2] sm:$0x1] }
 0x152   :  { %v219_v46 = vadd.f32 %v218_v45, %v147_v42 }
 0x153   :  { %724 = vtanh.f32 %v217_v44  ;;  %v436_v44 = vld [vmem:[#allocation4] sm:$0x1] }
 0x154   :  { %726 = vtanh.f32 %v219_v46 }
 0x15d   :  { %v725_v1 = vpop.eup %724 }
 0x15e   :  { %v727_v47 = vpop.eup %726  ;;  %594 = vmatmul.mubr.f32.vlgmr.msra.gmra.mrb[0].mxu1 %v725_v1 }
 0x15f   :  { %629 = vmatmul.mubr.f32.vlgmr.msra.gmra.mrb[2].mxu0 %v727_v47 }
 0x231   :  { %v312_v50 = vpop.f32.mrb[0].mxu1 }
 0x232   :  { %v313_v51 = vadd.f32 %v525_v48, %v312_v50  ;;  %v595_v52 = vpop.f32.mrb[1].mxu1  ;;  %v405_v53 = vpop.f32.mrb[2].mxu0  ;;  %v445_v48 = vld [vmem:[#allocation5] sm:$0x1] }
 0x233   :  { %v406_v54 = vadd.f32 %v526_v49, %v405_v53  ;;  %v630_v55 = vpop.f32.mrb[3].mxu0 }
 0x234   :  { %v456_v56 = vrot.slane %v313_v51, 4  ;;  %v465_v57 = vmul.f32 %v313_v51, %v313_v51  ;;  %v413_v15 = vsub.f32 %v313_v51, %v105_v12 }
 0x235   :  { %728 = vtanh.f32 %v406_v54 }
 0x236   :  { %v457_v58 = vadd.f32 %v456_v56, %v313_v51  ;;  %v466_v59 = vrot.slane %v465_v57, 4  ;;  %v414_v16 = vmul.f32 %v413_v15, %v413_v15 }
 0x238   :  { %v458_v60 = vrot.slane %v457_v58, 2  ;;  %v467_v61 = vadd.f32 %v466_v59, %v465_v57  ;;  %v415_v17 = vmul.f32 -0.5, %v414_v16 }
 0x23a   :  { %v459_v62 = vadd.f32 %v458_v60, %v457_v58  ;;  %v468_v63 = vrot.slane %v467_v61, 2 }
 0x23c   :  { %v460_v2 = vrot.slane %v459_v62, 1  ;;  %v469_v3 = vadd.f32 %v468_v63, %v467_v61 }
 0x23e   :  { %v461_v5 = vadd.f32 %v460_v2, %v459_v62  ;;  %v470_v6 = vrot.slane %v469_v3, 1 }
 0x23f   :  { %v729_v7 = vpop.eup %728 }
 0x240   :  { %v462_v9 = vadd.f32 %v461_v5, %v455_v4  ;;  %v471_v10 = vadd.f32 %v470_v6, %v469_v3  ;;  %v410_v11 = vsub.f32 0.0, %v729_v7 }
 0x242   :  { %463 = vst [vmem:[#allocation6] sm:$0x1] %v462_v9  ;;  %v472_v13 = vadd.f32 %v471_v10, %v464_v8  ;;  %v411_v14 = vmul.f32 1.442695, %v410_v11  ;;  %v502_v8 = vand.u32 127, %v140_v37 }
 0x244   :  { %473 = vst [vmem:[#allocation7] sm:$0x1] %v472_v13  ;;  %730 = vpow2.f32 %v411_v14  ;;  %vm504_vm2 = vcmp.eq.s32.totalorder %v502_v8, 1  ;;  %vm503_vm3 = vcmp.eq.s32.totalorder %v502_v8, 0 }
 0x249   :  { %v477_v52 = vld [vmem:[#allocation6] sm:$0x1] }
 0x24a   :  { %v478_v54 = vmul.f32 0.125, %v477_v52 }
 0x24b   :  { %v479_v55 = vld [vmem:[#allocation7] sm:$0x1] }
 0x24c   :  { %v482_v56 = vmul.f32 2.0, %v478_v54  ;;  %v480_v61 = vmul.f32 0.125, %v479_v55 }
 0x24e   :  { %v731_v18 = vpop.eup %730 }
 0x24f   :  { %v417_v19 = vmul.f32 %v731_v18, %v313_v51  ;;  %v428_v20 = vrot.slane %v731_v18, 4  ;;  %v416_v21 = vmul.f32 %v731_v18, %v415_v17 }
 0x251   :  { %v429_v22 = vadd.f32 %v731_v18, %v428_v20  ;;  %v419_v23 = vrot.slane %v416_v21, 4  ;;  %v437_v24 = vrot.slane %v417_v19, 4  ;;  %v446_v25 = vmul.f32 %v417_v19, %v313_v51 }
 0x253   :  { %v420_v26 = vadd.f32 %v419_v23, %v416_v21  ;;  %v430_v27 = vrot.slane %v429_v22, 2  ;;  %v438_v28 = vadd.f32 %v437_v24, %v417_v19  ;;  %v447_v29 = vrot.slane %v446_v25, 4 }
 0x255   :  { %v421_v30 = vrot.slane %v420_v26, 2  ;;  %v431_v31 = vadd.f32 %v430_v27, %v429_v22  ;;  %v439_v32 = vrot.slane %v438_v28, 2  ;;  %v448_v33 = vadd.f32 %v447_v29, %v446_v25 }
 0x257   :  { %v422_v34 = vadd.f32 %v421_v30, %v420_v26  ;;  %v432_v35 = vrot.slane %v431_v31, 1  ;;  %v440_v36 = vadd.f32 %v439_v32, %v438_v28  ;;  %v449_v38 = vrot.slane %v448_v33, 2 }
 0x259   :  { %v423_v40 = vrot.slane %v422_v34, 1  ;;  %v433_v41 = vadd.f32 %v432_v35, %v431_v31  ;;  %v441_v0 = vrot.slane %v440_v36, 1  ;;  %v450_v42 = vadd.f32 %v449_v38, %v448_v33 }
 0x25b   :  { %v424_v45 = vadd.f32 %v423_v40, %v422_v34  ;;  %v434_v46 = vadd.f32 %v433_v41, %v427_v39  ;;  %v442_v1 = vadd.f32 %v441_v0, %v440_v36  ;;  %v451_v47 = vrot.slane %v450_v42, 1 }
 0x25d   :  { %v425_v49 = vadd.f32 %v424_v45, %v418_v43  ;;  %435 = vst [vmem:[#allocation3] sm:$0x1] %v434_v46  ;;  %v443_v50 = vadd.f32 %v442_v1, %v436_v44  ;;  %v452_v51 = vadd.f32 %v451_v47, %v450_v42 }
 0x25f   :  { %426 = vst [vmem:[#allocation2] sm:$0x1] %v425_v49  ;;  %444 = vst [vmem:[#allocation4] sm:$0x1] %v443_v50  ;;  %v453_v53 = vadd.f32 %v452_v51, %v445_v48 }
 0x261   :  { %454 = vst [vmem:[#allocation5] sm:$0x1] %v453_v53 }
 0x264   :  { %v486_v59 = vld [vmem:[#allocation3] sm:$0x1] }
 0x265   :  { %v487_v3 = vmul.f32 %v486_v59, %v480_v61 }
 0x266   :  { %v490_v57 = vld [vmem:[#allocation2] sm:$0x1]  ;;  %v483_v58 = vld [vmem:[#allocation4] sm:$0x1] }
 0x267   :  { %v492_v60 = vsel %vm491_vm1, %v490_v57, 0.0  ;;  %v484_v62 = vmul.f32 %v483_v58, %v482_v56 }
 0x268   :  { %493 = vadd.xlane.f32.xlu0 %v492_v60  ;;  %v481_v63 = vld [vmem:[#allocation5] sm:$0x1] }
 0x269   :  { %v485_v2 = vsub.f32 %v481_v63, %v484_v62 }
 0x26b   :  { %v488_v4 = vadd.f32 %v487_v3, %v485_v2 }
 0x26d   :  { %v489_v5 = vmul.f32 -0.5, %v488_v4 }
 0x26f   :  { %v495_v6 = vsel %vm491_vm1, %v489_v5, 0.0 }
 0x270   :  { %496 = vadd.xlane.f32.xlu0 %v495_v6 }
 0x2f5   :  { %v494_v7 = vpop.xlane.xlu0 %493 }
 0x2f6   :  { %v498_v12 = vmul.f32 0.125, %v494_v7 }
 0x2fd   :  { %v497_v9 = vpop.xlane.xlu0 %496 }
 0x2fe   :  { %v499_v10 = vsub.f32 %v494_v7, %v497_v9 }
 0x300   :  { %v500_v11 = vmul.f32 0.125, %v499_v10 }
 0x302   :  { %v505_v13 = vsel %vm504_vm2, %v500_v11, 0.0 }
 0x303   :  { %v506_v14 = vsel %vm503_vm3, %v498_v12, %v505_v13 }
 0x304   :  { %507 = vst [vmem:[#allocation17] sm:$0x1] %v506_v14 }
 0x305   :  { %853 = shalt.err (!%p850_p2)
}
 0x306   :  { %s854_s28 = scalar_lea.hbm %s1066_s8, 16 }
 0x307   :  { %p855_p3 = scmp.ne.s32.totalorder %s1066_s8, %s854_s28  ;;  %p858_p4 = scmp.lt.u32.totalorder %s854_s28, %s1066_s8 }
 0x309   :  { %p860_p5 = pnand %p858_p4, %p855_p3 }
 0x30b   :  { %863 = shalt.err (!%p860_p5)
}
 0x30c   :  { %517 = dma.vmem_to_hbm [thread:$0]  %s515_s5, 16, %s1066_s8, [#allocation10]  }
 0x30d   :  { %870 = dma.done.wait [#allocation10], 16  }
 0x30e   :  { %871 = vsyncadd [#allocation10], 4294967280 }
 0x30f   :  { %521 = vsyncpa [#allocation9], 1 }
 0x310   :  { %522 = vsyncpa [#allocation12], 1 }
 0x311   :  { %523 = vsyncpa [#allocation15], 1 }
 0x312   :  { %524 = vsyncpa [#allocation10], 1 }

</bundles_post_ra>
